<compile_context>
chip_gen: v6e
topology: v6e:2x2x1
jax: 0.10.0
libtpu: 0.0.40
codegen_flags: <defaults>
</compile_context>

<pallas_src>
from functools import partial

import numpy as np
import jax
import jax.numpy as jnp
from jax.experimental import pallas as pl
from jax.experimental.pallas import tpu as pltpu

LEAKY_SLOPE = 0.01   # torch.nn.functional.leaky_relu default negative_slope
BN_EPS = 1e-5        # torch BatchNorm1d default eps
H_GC = 8             # GraphConv hidden width (conv21 out_channels)


def _leaky(x):
    return jnp.where(x >= 0, x, LEAKY_SLOPE * x)


# ------------------------------------------------------------------
# Static layout of the packed parameter slabs
# ------------------------------------------------------------------
def _slab_layout(N, F, C, H=H_GC):
    P = N * (N - 1) // 2
    F2 = 2 * F
    # weight slab: rows stacked, columns right-padded to F2 (=64)
    rw, off = {}, 0
    for name, rows in (("w11", P), ("w12", F2), ("w21", F), ("w22", F),
                       ("wc", F), ("wd1", F), ("wrel2", H), ("wroot2", H)):
        rw[name] = off
        off += rows
    n_rows = off
    # vector slab: all bias / 1-row vectors concatenated along lanes
    vo, voff = {}, 0
    for name, width in (("b11", F2), ("b12", F), ("b21", F), ("b22", F),
                        ("bc", C), ("bd1", N), ("brel1", H), ("brel2", N),
                        ("wrel1", H), ("wroot1", H)):
        vo[name] = voff
        voff += width
    vec_w = ((voff + 127) // 128) * 128
    return P, F2, H, rw, n_rows, vo, vec_w


# ------------------------------------------------------------------
# Fused kernel: FCEncoder + reparameterize + Classifier + GCNDecoder
# ------------------------------------------------------------------
def make_fused_kernel(B, N, F, C):
    P, F2, H, rw, _, vo, _ = _slab_layout(N, F, C)
    STATS_W = ((3 * F + C + 127) // 128) * 128

    def kernel(x_ref, eps_ref, a_ref, w_ref, v_ref, conn_ref, stats_ref):
        x = x_ref[...]          # (B, P)   strict-upper-triangle features
        eps = eps_ref[...]      # (B, F)
        a = a_ref[...]          # (B, N, N) degree-normalized weighted adjacency

        def vrow(name, width):  # (1, width) static lane slice of the vector slab
            return v_ref[:, vo[name]:vo[name] + width]

        # ---- FCEncoder (dropout = identity in eval; BN folded into fc12/fc21/fc22) ----
        h1 = _leaky(jnp.dot(x, w_ref[rw["w11"]:rw["w11"] + P, :F2],
                            preferred_element_type=jnp.float32) + vrow("b11", F2))
        h1 = _leaky(jnp.dot(h1, w_ref[rw["w12"]:rw["w12"] + F2, :F],
                            preferred_element_type=jnp.float32) + vrow("b12", F))
        h_mean = jnp.dot(h1, w_ref[rw["w21"]:rw["w21"] + F, :F],
                         preferred_element_type=jnp.float32) + vrow("b21", F)
        h_logvar = jnp.dot(h1, w_ref[rw["w22"]:rw["w22"] + F, :F],
                           preferred_element_type=jnp.float32) + vrow("b22", F)

        # ---- reparameterize ----
        h = h_mean + eps * jnp.exp(0.5 * h_logvar)

        # ---- classifier (eval mode: applied to h_mean) ----
        y = jnp.dot(h_mean, w_ref[rw["wc"]:rw["wc"] + F, :C],
                    preferred_element_type=jnp.float32) + vrow("bc", C)

        # ---- GCNDecoder.fc1 + leaky_relu (dropout = identity) ----
        # x0[b, n] is the scalar feature of node n of graph b (torch's (B*N, 1) view)
        x0 = _leaky(jnp.dot(h, w_ref[rw["wd1"]:rw["wd1"] + F, :N],
                            preferred_element_type=jnp.float32) + vrow("bd1", N))   # (B, N)

        # ---- GraphConv(1 -> 8, aggr='mean'):
        #   out_i = W_rel * mean_{j->i}(w_ji x_j) + b_rel + W_root * x_i
        # mean-normalization is pre-baked into `a`; in_channels == 1, so the
        # aggregation is a VPU multiply + lane reduction (no 1-column MXU matmul).
        aggr1 = jnp.sum(a * x0[:, None, :], axis=-1)                       # (B, N)
        wrel1 = vrow("wrel1", H).reshape(1, 1, H)
        wroot1 = vrow("wroot1", H).reshape(1, 1, H)
        brel1 = vrow("brel1", H).reshape(1, 1, H)
        g1 = _leaky(aggr1[:, :, None] * wrel1 + x0[:, :, None] * wroot1 + brel1)   # (B, N, 8)

        # ---- GraphConv(8 -> N, aggr='mean'): batched aggregation over per-graph A ----
        aggr2 = jnp.einsum("bij,bjh->bih", a, g1,
                           preferred_element_type=jnp.float32)             # (B, N, 8)
        g1_2d = g1.reshape(B * N, H)
        aggr2_2d = aggr2.reshape(B * N, H)
        g2 = (jnp.dot(aggr2_2d, w_ref[rw["wrel2"]:rw["wrel2"] + H, :N],
                      preferred_element_type=jnp.float32)
              + jnp.dot(g1_2d, w_ref[rw["wroot2"]:rw["wroot2"] + H, :N],
                        preferred_element_type=jnp.float32)
              + vrow("brel2", N)).reshape(B, N, N)

        # ---- symmetrize + sigmoid ----
        conn_ref[...] = jax.nn.sigmoid(0.5 * (g2 + jnp.transpose(g2, (0, 2, 1))))

        # ---- packed lane-dense small outputs: [h_mean | h_logvar | h | y | 0-pad] ----
        stats_ref[:, 0:F] = h_mean
        stats_ref[:, F:2 * F] = h_logvar
        stats_ref[:, 2 * F:3 * F] = h
        stats_ref[:, 3 * F:3 * F + C] = y
        stats_ref[:, 3 * F + C:STATS_W] = jnp.zeros((B, STATS_W - 3 * F - C), jnp.float32)

    return kernel, STATS_W


# ------------------------------------------------------------------
# Parameter init (deterministic, torch-Linear-style uniform bounds)
# ------------------------------------------------------------------
def init_params(key, in_channels, out_channels, feature_channels, num_nodes):
    P = in_channels * (in_channels - 1) // 2
    F = feature_channels

    def lin(k, fan_in, fan_out, bias=True):
        k1, k2 = jax.random.split(k)
        bound = 1.0 / np.sqrt(fan_in)
        W = jax.random.uniform(k1, (fan_out, fan_in), jnp.float32, -bound, bound)
        b = jax.random.uniform(k2, (fan_out,), jnp.float32, -bound, bound) if bias else None
        return W, b

    keys = jax.random.split(key, 10)
    params = {}
    params["fc11"] = lin(keys[0], P, 2 * F)
    params["fc12"] = lin(keys[1], 2 * F, F)
    params["fc21"] = lin(keys[2], F, F)
    params["fc22"] = lin(keys[3], F, F)
    params["cls"] = lin(keys[4], F, out_channels)
    params["dfc1"] = lin(keys[5], F, num_nodes)
    params["rel1"] = lin(keys[6], 1, H_GC)                    # GraphConv.lin_rel (bias)
    params["root1"] = lin(keys[7], 1, H_GC, bias=False)[0]    # GraphConv.lin_root (no bias)
    params["rel2"] = lin(keys[8], H_GC, in_channels)
    params["root2"] = lin(keys[9], H_GC, in_channels, bias=False)[0]
    # BatchNorm1d eval-mode buffers / affine (fresh-module defaults; the fold below
    # works for arbitrary trained buffers as well)
    params["bn1"] = (jnp.zeros((2 * F,)), jnp.ones((2 * F,)),
                     jnp.ones((2 * F,)), jnp.zeros((2 * F,)))
    params["bn2"] = (jnp.zeros((F,)), jnp.ones((F,)),
                     jnp.ones((F,)), jnp.zeros((F,)))
    return params


# ------------------------------------------------------------------
# One-time parameter packing: fold eval BN, transpose, stack into two slabs
# ------------------------------------------------------------------
def pack_params(params, N, F, C):
    P, F2, H, _, n_rows, _, vec_w = _slab_layout(N, F, C)

    W11, b11 = params["fc11"]
    W12, b12 = params["fc12"]
    W21, b21 = params["fc21"]
    W22, b22 = params["fc22"]
    Wc, bc = params["cls"]
    Wd1, bd1 = params["dfc1"]
    Wrel1, brel1 = params["rel1"]
    Wroot1 = params["root1"]
    Wrel2, brel2 = params["rel2"]
    Wroot2 = params["root2"]
    rm1, rv1, gamma1, beta1 = params["bn1"]
    rm2, rv2, gamma2, beta2 = params["bn2"]

    # eval-mode BN sits AFTER leaky_relu, so fold it into the consumer Linear:
    #   fcW(bn(z)) = fcW(z*s + t) = (W*s) z + (W t + b)
    s1 = gamma1 * jax.lax.rsqrt(rv1 + BN_EPS); t1 = beta1 - rm1 * s1
    s2 = gamma2 * jax.lax.rsqrt(rv2 + BN_EPS); t2 = beta2 - rm2 * s2
    W12f, b12f = W12 * s1[None, :], b12 + W12 @ t1
    W21f, b21f = W21 * s2[None, :], b21 + W21 @ t2
    W22f, b22f = W22 * s2[None, :], b22 + W22 @ t2

    def padc(w):   # right-pad columns to the common slab width (= 2F)
        return jnp.pad(w, ((0, 0), (0, F2 - w.shape[1])))

    wslab = jnp.concatenate([
        W11.T, padc(W12f.T), padc(W21f.T), padc(W22f.T),
        padc(Wc.T), padc(Wd1.T), padc(Wrel2.T), padc(Wroot2.T)], axis=0
    ).astype(jnp.float32)
    assert wslab.shape == (n_rows, F2)

    vec = jnp.concatenate([
        b11, b12f, b21f, b22f, bc, bd1, brel1, brel2,
        Wrel1.reshape(-1), Wroot1.reshape(-1)]).astype(jnp.float32)
    vslab = jnp.pad(vec, (0, vec_w - vec.shape[0])).reshape(1, vec_w)
    return wslab, vslab


# ------------------------------------------------------------------
# Forward wrapper (glue in plain JAX, all dense math in one Pallas kernel)
# ------------------------------------------------------------------
@partial(jax.jit, static_argnames=("num_graphs", "num_nodes",
                                   "feature_channels", "out_channels"))
def gcnvae_forward(wslab, vslab, x, edge_index, edge_attr, eps_key, *,
                   num_graphs, num_nodes, feature_channels, out_channels):
    B, N, F, C = num_graphs, num_nodes, feature_channels, out_channels
    P = N * (N - 1) // 2

    # encoder input: strict upper triangle of each graph's (N, N) matrix (static gather)
    xg = x.reshape(B, N, N).astype(jnp.float32)
    iu, ju = np.triu_indices(N, k=1)
    x_triu = xg[:, iu, ju].reshape(B, P)

    eps = jax.random.normal(eps_key, (B, F), jnp.float32)    # torch.randn_like(std)

    # per-graph degree-normalized dense adjacency (block-diagonal PyG batch:
    # edges never cross graphs, so dst // N selects the graph).  Scatter-add glue.
    src, dst = edge_index[0], edge_index[1]
    gidx = dst // N
    A = jnp.zeros((B, N, N), jnp.float32).at[gidx, dst % N, src % N].add(
        edge_attr.astype(jnp.float32))
    deg = jnp.zeros((B, N), jnp.float32).at[gidx, dst % N].add(1.0)
    A = A / jnp.maximum(deg, 1.0)[:, :, None]

    kernel, STATS_W = make_fused_kernel(B, N, F, C)
    vspec = pl.BlockSpec(memory_space=pltpu.MemorySpace.VMEM)
    conn_est, stats = pl.pallas_call(
        kernel,
        out_shape=(jax.ShapeDtypeStruct((B, N, N), jnp.float32),
                   jax.ShapeDtypeStruct((B, STATS_W), jnp.float32)),
        in_specs=[vspec] * 5,
        out_specs=(vspec, vspec),
    )(x_triu, eps, A, wslab, vslab)

    h_mean = stats[:, 0:F]
    h_logvar = stats[:, F:2 * F]
    h = stats[:, 2 * F:3 * F]
    y = stats[:, 3 * F:3 * F + C]
    param = None   # GCNDecoder returns (conn_est, None)
    return conn_est, y, h_mean, h_logvar, param, h


if __name__ == "__main__":
    # in_channels = num_nodes = 16 (N x N connectivity), feature_channels = 32, out_channels = 4
    B, N, F, C = 2, 16, 32, 4
    key = jax.random.PRNGKey(0)
    kp, kx, kw, keps = jax.random.split(key, 4)

    params = init_params(kp, N, C, F, N)
    wslab, vslab = pack_params(params, N, F, C)        # one-time packing, not per forward

    # data.x : (B * num_nodes, num_nodes) stacked connectivity matrices
    x = jax.random.uniform(kx, (B * N, N), jnp.float32)

    # S = (edge_index, edge_attr): directed ring + reverse per graph
    src_list, dst_list = [], []
    for b in range(B):
        off = b * N
        for i in range(N):
            src_list += [off + i, off + (i + 1) % N]
            dst_list += [off + (i + 1) % N, off + i]
    edge_index = jnp.array([src_list, dst_list], dtype=jnp.int32)
    edge_attr = jax.random.uniform(kw, (2 * N * B,), jnp.float32)

    conn_est, y, h_mean, h_logvar, param, h = gcnvae_forward(
        wslab, vslab, x, edge_index, edge_attr, keps,
        num_graphs=B, num_nodes=N, feature_channels=F, out_channels=C)
    jax.block_until_ready((conn_est, y, h_mean, h_logvar, h))

    assert conn_est.shape == (B, N, N)
    assert y.shape == (B, C)
    assert h_mean.shape == (B, F) and h_logvar.shape == (B, F) and h.shape == (B, F)
    assert param is None
    assert bool(jnp.all(jnp.isfinite(conn_est))) and bool(jnp.all(jnp.isfinite(y)))
    assert bool(jnp.all(conn_est >= 0.0)) and bool(jnp.all(conn_est <= 1.0))
    assert bool(jnp.allclose(conn_est, jnp.transpose(conn_est, (0, 2, 1)), atol=1e-6))
    print("KERNEL_OK")
</pallas_src>

<mosaic_0001>
module attributes {stable_mosaic.version = 11 : i64} {
  func.func private @main(%arg0: i32) attributes {dimension_semantics = [#tpu.dimension_semantics<core_parallel>], iteration_bounds = array<i64: 2>, tpu.core_type = #tpu.core_type<sc_scalar_subcore>, window_params = []} {
    return
  }
}

module attributes {stable_mosaic.version = 11 : i64} {
  func.func private @main(%arg0: i32) attributes {dimension_semantics = [#tpu.dimension_semantics<core_parallel>], iteration_bounds = array<i64: 2>, tpu.core_type = #tpu.core_type<sc_scalar_subcore>, window_params = []} {
    return
  }
}

module attributes {stable_mosaic.version = 11 : i64} {
  func.func @kernel(%arg0: memref<2x120xf32, #tpu.memory_space<vmem>>, %arg1: memref<2x32xf32, #tpu.memory_space<vmem>>, %arg2: memref<2x16x16xf32, #tpu.memory_space<vmem>>, %arg3: memref<328x64xf32, #tpu.memory_space<vmem>>, %arg4: memref<1x256xf32, #tpu.memory_space<vmem>>, %arg5: memref<2x16x16xf32, #tpu.memory_space<vmem>>, %arg6: memref<2x128xf32, #tpu.memory_space<vmem>>) attributes {dimension_semantics = [], scalar_prefetch = 0 : i64, scratch_operands = 0 : i64, tpu.core_type = #tpu.core_type<tc>} {
    %c0 = arith.constant 0 : index
    %c0_0 = arith.constant 0 : index
    %0 = vector.load %arg0[%c0, %c0_0] : memref<2x120xf32, #tpu.memory_space<vmem>>, vector<2x120xf32>
    %c0_1 = arith.constant 0 : index
    %c0_2 = arith.constant 0 : index
    %1 = vector.load %arg1[%c0_1, %c0_2] : memref<2x32xf32, #tpu.memory_space<vmem>>, vector<2x32xf32>
    %c0_3 = arith.constant 0 : index
    %c0_4 = arith.constant 0 : index
    %c0_5 = arith.constant 0 : index
    %2 = vector.load %arg2[%c0_3, %c0_4, %c0_5] : memref<2x16x16xf32, #tpu.memory_space<vmem>>, vector<2x16x16xf32>
    %c0_6 = arith.constant 0 : index
    %c0_7 = arith.constant 0 : index
    %3 = vector.load %arg3[%c0_6, %c0_7] : memref<328x64xf32, #tpu.memory_space<vmem>>, vector<120x64xf32>
    %cst = arith.constant dense<0.000000e+00> : vector<2x64xf32>
    %4 = tpu.matmul %0, %3, %cst {dimension_numbers = #tpu.dot_dimension_numbers<[1], [0], [0], [1], [0, 0, 1, 1], [], []>} : vector<2x120xf32>, vector<120x64xf32>, vector<2x64xf32> -> vector<2x64xf32>
    %c0_8 = arith.constant 0 : index
    %c0_9 = arith.constant 0 : index
    %5 = vector.load %arg4[%c0_8, %c0_9] : memref<1x256xf32, #tpu.memory_space<vmem>>, vector<1x64xf32>
    %6 = vector.broadcast %5 : vector<1x64xf32> to vector<2x64xf32>
    %7 = arith.addf %4, %6 : vector<2x64xf32>
    %cst_10 = arith.constant 0.000000e+00 : f32
    %8 = vector.broadcast %cst_10 : f32 to vector<2x64xf32>
    %9 = arith.cmpf oge, %7, %8 : vector<2x64xf32>
    %cst_11 = arith.constant 0.00999999977 : f32
    %10 = vector.broadcast %cst_11 : f32 to vector<2x64xf32>
    %11 = arith.mulf %10, %7 : vector<2x64xf32>
    %12 = arith.select %9, %7, %11 : vector<2x64xi1>, vector<2x64xf32>
    %c120 = arith.constant 120 : index
    %c0_12 = arith.constant 0 : index
    %13 = vector.load %arg3[%c120, %c0_12] : memref<328x64xf32, #tpu.memory_space<vmem>>, vector<64x32xf32>
    %cst_13 = arith.constant dense<0.000000e+00> : vector<2x32xf32>
    %14 = tpu.matmul %12, %13, %cst_13 {dimension_numbers = #tpu.dot_dimension_numbers<[1], [0], [0], [1], [0, 0, 1, 1], [], []>} : vector<2x64xf32>, vector<64x32xf32>, vector<2x32xf32> -> vector<2x32xf32>
    %c0_14 = arith.constant 0 : index
    %c64 = arith.constant 64 : index
    %15 = vector.load %arg4[%c0_14, %c64] : memref<1x256xf32, #tpu.memory_space<vmem>>, vector<1x32xf32>
    %16 = vector.broadcast %15 : vector<1x32xf32> to vector<2x32xf32>
    %17 = arith.addf %14, %16 : vector<2x32xf32>
    %cst_15 = arith.constant 0.000000e+00 : f32
    %18 = vector.broadcast %cst_15 : f32 to vector<2x32xf32>
    %19 = arith.cmpf oge, %17, %18 : vector<2x32xf32>
    %cst_16 = arith.constant 0.00999999977 : f32
    %20 = vector.broadcast %cst_16 : f32 to vector<2x32xf32>
    %21 = arith.mulf %20, %17 : vector<2x32xf32>
    %22 = arith.select %19, %17, %21 : vector<2x32xi1>, vector<2x32xf32>
    %c184 = arith.constant 184 : index
    %c0_17 = arith.constant 0 : index
    %23 = vector.load %arg3[%c184, %c0_17] : memref<328x64xf32, #tpu.memory_space<vmem>>, vector<32x32xf32>
    %cst_18 = arith.constant dense<0.000000e+00> : vector<2x32xf32>
    %24 = tpu.matmul %22, %23, %cst_18 {dimension_numbers = #tpu.dot_dimension_numbers<[1], [0], [0], [1], [0, 0, 1, 1], [], []>} : vector<2x32xf32>, vector<32x32xf32>, vector<2x32xf32> -> vector<2x32xf32>
    %c0_19 = arith.constant 0 : index
    %c96 = arith.constant 96 : index
    %25 = vector.load %arg4[%c0_19, %c96] : memref<1x256xf32, #tpu.memory_space<vmem>>, vector<1x32xf32>
    %26 = vector.broadcast %25 : vector<1x32xf32> to vector<2x32xf32>
    %27 = arith.addf %24, %26 : vector<2x32xf32>
    %c216 = arith.constant 216 : index
    %c0_20 = arith.constant 0 : index
    %28 = vector.load %arg3[%c216, %c0_20] : memref<328x64xf32, #tpu.memory_space<vmem>>, vector<32x32xf32>
    %cst_21 = arith.constant dense<0.000000e+00> : vector<2x32xf32>
    %29 = tpu.matmul %22, %28, %cst_21 {dimension_numbers = #tpu.dot_dimension_numbers<[1], [0], [0], [1], [0, 0, 1, 1], [], []>} : vector<2x32xf32>, vector<32x32xf32>, vector<2x32xf32> -> vector<2x32xf32>
    %c0_22 = arith.constant 0 : index
    %c128 = arith.constant 128 : index
    %30 = vector.load %arg4[%c0_22, %c128] : memref<1x256xf32, #tpu.memory_space<vmem>>, vector<1x32xf32>
    %31 = vector.broadcast %30 : vector<1x32xf32> to vector<2x32xf32>
    %32 = arith.addf %29, %31 : vector<2x32xf32>
    %cst_23 = arith.constant 5.000000e-01 : f32
    %33 = vector.broadcast %cst_23 : f32 to vector<2x32xf32>
    %34 = arith.mulf %33, %32 : vector<2x32xf32>
    %35 = math.exp %34 : vector<2x32xf32>
    %36 = arith.mulf %1, %35 : vector<2x32xf32>
    %37 = arith.addf %27, %36 : vector<2x32xf32>
    %c248 = arith.constant 248 : index
    %c0_24 = arith.constant 0 : index
    %38 = vector.load %arg3[%c248, %c0_24] : memref<328x64xf32, #tpu.memory_space<vmem>>, vector<32x4xf32>
    %cst_25 = arith.constant dense<0.000000e+00> : vector<2x4xf32>
    %39 = tpu.matmul %27, %38, %cst_25 {dimension_numbers = #tpu.dot_dimension_numbers<[1], [0], [0], [1], [0, 0, 1, 1], [], []>} : vector<2x32xf32>, vector<32x4xf32>, vector<2x4xf32> -> vector<2x4xf32>
    %c0_26 = arith.constant 0 : index
    %c160 = arith.constant 160 : index
    %40 = vector.load %arg4[%c0_26, %c160] : memref<1x256xf32, #tpu.memory_space<vmem>>, vector<1x4xf32>
    %41 = vector.broadcast %40 : vector<1x4xf32> to vector<2x4xf32>
    %42 = arith.addf %39, %41 : vector<2x4xf32>
    %c280 = arith.constant 280 : index
    %c0_27 = arith.constant 0 : index
    %43 = vector.load %arg3[%c280, %c0_27] : memref<328x64xf32, #tpu.memory_space<vmem>>, vector<32x16xf32>
    %cst_28 = arith.constant dense<0.000000e+00> : vector<2x16xf32>
    %44 = tpu.matmul %37, %43, %cst_28 {dimension_numbers = #tpu.dot_dimension_numbers<[1], [0], [0], [1], [0, 0, 1, 1], [], []>} : vector<2x32xf32>, vector<32x16xf32>, vector<2x16xf32> -> vector<2x16xf32>
    %c0_29 = arith.constant 0 : index
    %c164 = arith.constant 164 : index
    %45 = vector.load %arg4[%c0_29, %c164] : memref<1x256xf32, #tpu.memory_space<vmem>>, vector<1x16xf32>
    %46 = vector.broadcast %45 : vector<1x16xf32> to vector<2x16xf32>
    %47 = arith.addf %44, %46 : vector<2x16xf32>
    %cst_30 = arith.constant 0.000000e+00 : f32
    %48 = vector.broadcast %cst_30 : f32 to vector<2x16xf32>
    %49 = arith.cmpf oge, %47, %48 : vector<2x16xf32>
    %cst_31 = arith.constant 0.00999999977 : f32
    %50 = vector.broadcast %cst_31 : f32 to vector<2x16xf32>
    %51 = arith.mulf %50, %47 : vector<2x16xf32>
    %52 = arith.select %49, %47, %51 : vector<2x16xi1>, vector<2x16xf32>
    %53 = vector.shape_cast %52 : vector<2x16xf32> to vector<2x1x16xf32>
    %54 = vector.broadcast %53 : vector<2x1x16xf32> to vector<2x16x16xf32>
    %55 = arith.mulf %2, %54 : vector<2x16x16xf32>
    %cst_32 = arith.constant dense<0.000000e+00> : vector<2x16xf32>
    %56 = vector.multi_reduction <add>, %55, %cst_32 [2] : vector<2x16x16xf32> to vector<2x16xf32>
    %c0_33 = arith.constant 0 : index
    %c204 = arith.constant 204 : index
    %57 = vector.load %arg4[%c0_33, %c204] : memref<1x256xf32, #tpu.memory_space<vmem>>, vector<1x8xf32>
    %58 = vector.shape_cast %57 : vector<1x8xf32> to vector<1x1x8xf32>
    %c0_34 = arith.constant 0 : index
    %c212 = arith.constant 212 : index
    %59 = vector.load %arg4[%c0_34, %c212] : memref<1x256xf32, #tpu.memory_space<vmem>>, vector<1x8xf32>
    %60 = vector.shape_cast %59 : vector<1x8xf32> to vector<1x1x8xf32>
    %c0_35 = arith.constant 0 : index
    %c180 = arith.constant 180 : index
    %61 = vector.load %arg4[%c0_35, %c180] : memref<1x256xf32, #tpu.memory_space<vmem>>, vector<1x8xf32>
    %62 = vector.shape_cast %61 : vector<1x8xf32> to vector<1x1x8xf32>
    %63 = vector.shape_cast %56 : vector<2x16xf32> to vector<2x16x1xf32>
    %64 = vector.broadcast %63 : vector<2x16x1xf32> to vector<2x16x8xf32>
    %65 = vector.broadcast %58 : vector<1x1x8xf32> to vector<2x16x8xf32>
    %66 = arith.mulf %64, %65 : vector<2x16x8xf32>
    %67 = vector.shape_cast %52 : vector<2x16xf32> to vector<2x16x1xf32>
    %68 = vector.broadcast %67 : vector<2x16x1xf32> to vector<2x16x8xf32>
    %69 = vector.broadcast %60 : vector<1x1x8xf32> to vector<2x16x8xf32>
    %70 = arith.mulf %68, %69 : vector<2x16x8xf32>
    %71 = arith.addf %66, %70 : vector<2x16x8xf32>
    %72 = vector.broadcast %62 : vector<1x1x8xf32> to vector<2x16x8xf32>
    %73 = arith.addf %71, %72 : vector<2x16x8xf32>
    %cst_36 = arith.constant 0.000000e+00 : f32
    %74 = vector.broadcast %cst_36 : f32 to vector<2x16x8xf32>
    %75 = arith.cmpf oge, %73, %74 : vector<2x16x8xf32>
    %cst_37 = arith.constant 0.00999999977 : f32
    %76 = vector.broadcast %cst_37 : f32 to vector<2x16x8xf32>
    %77 = arith.mulf %76, %73 : vector<2x16x8xf32>
    %78 = arith.select %75, %73, %77 : vector<2x16x8xi1>, vector<2x16x8xf32>
    "tpu.trace_start"() <{level = 10 : i32, message = "bij,bjh->bih"}> : () -> ()
    %cst_38 = arith.constant dense<0.000000e+00> : vector<2x16x8xf32>
    %79 = tpu.matmul %2, %78, %cst_38 {dimension_numbers = #tpu.dot_dimension_numbers<[2], [1], [1], [2], [0, 0, 0, 1, 1, 2], [0], [0]>} : vector<2x16x16xf32>, vector<2x16x8xf32>, vector<2x16x8xf32> -> vector<2x16x8xf32>
    "tpu.trace_stop"() : () -> ()
    %80 = vector.shape_cast %78 : vector<2x16x8xf32> to vector<32x8xf32>
    %81 = vector.shape_cast %79 : vector<2x16x8xf32> to vector<32x8xf32>
    %c312 = arith.constant 312 : index
    %c0_39 = arith.constant 0 : index
    %82 = vector.load %arg3[%c312, %c0_39] : memref<328x64xf32, #tpu.memory_space<vmem>>, vector<8x16xf32>
    %cst_40 = arith.constant dense<0.000000e+00> : vector<32x16xf32>
    %83 = tpu.matmul %81, %82, %cst_40 {dimension_numbers = #tpu.dot_dimension_numbers<[1], [0], [0], [1], [0, 0, 1, 1], [], []>} : vector<32x8xf32>, vector<8x16xf32>, vector<32x16xf32> -> vector<32x16xf32>
    %c320 = arith.constant 320 : index
    %c0_41 = arith.constant 0 : index
    %84 = vector.load %arg3[%c320, %c0_41] : memref<328x64xf32, #tpu.memory_space<vmem>>, vector<8x16xf32>
    %cst_42 = arith.constant dense<0.000000e+00> : vector<32x16xf32>
    %85 = tpu.matmul %80, %84, %cst_42 {dimension_numbers = #tpu.dot_dimension_numbers<[1], [0], [0], [1], [0, 0, 1, 1], [], []>} : vector<32x8xf32>, vector<8x16xf32>, vector<32x16xf32> -> vector<32x16xf32>
    %86 = arith.addf %83, %85 : vector<32x16xf32>
    %c0_43 = arith.constant 0 : index
    %c188 = arith.constant 188 : index
    %87 = vector.load %arg4[%c0_43, %c188] : memref<1x256xf32, #tpu.memory_space<vmem>>, vector<1x16xf32>
    %88 = vector.broadcast %87 : vector<1x16xf32> to vector<32x16xf32>
    %89 = arith.addf %86, %88 : vector<32x16xf32>
    %90 = vector.shape_cast %89 : vector<32x16xf32> to vector<2x16x16xf32>
    %91 = tpu.transpose %90, [0, 2, 1] : vector<2x16x16xf32> -> vector<2x16x16xf32>
    %92 = arith.addf %90, %91 : vector<2x16x16xf32>
    %cst_44 = arith.constant 5.000000e-01 : f32
    %93 = vector.broadcast %cst_44 : f32 to vector<2x16x16xf32>
    %94 = arith.mulf %93, %92 : vector<2x16x16xf32>
    %95 = arith.negf %94 : vector<2x16x16xf32>
    %96 = math.exp %95 : vector<2x16x16xf32>
    %cst_45 = arith.constant 1.000000e+00 : f32
    %97 = vector.broadcast %cst_45 : f32 to vector<2x16x16xf32>
    %98 = arith.addf %97, %96 : vector<2x16x16xf32>
    %99 = arith.divf %97, %98 : vector<2x16x16xf32>
    %c0_46 = arith.constant 0 : index
    %c0_47 = arith.constant 0 : index
    %c0_48 = arith.constant 0 : index
    %100 = vector.load %arg5[%c0_46, %c0_47, %c0_48] : memref<2x16x16xf32, #tpu.memory_space<vmem>>, vector<2x16x16xf32>
    tpu.vector_store %arg5[%c0_46, %c0_47, %c0_48], %99 {strides = array<i32>} : memref<2x16x16xf32, #tpu.memory_space<vmem>>, vector<2x16x16xf32>,
    %c0_49 = arith.constant 0 : index
    %c0_50 = arith.constant 0 : index
    %101 = vector.load %arg6[%c0_49, %c0_50] : memref<2x128xf32, #tpu.memory_space<vmem>>, vector<2x32xf32>
    tpu.vector_store %arg6[%c0_49, %c0_50], %27 {strides = array<i32>} : memref<2x128xf32, #tpu.memory_space<vmem>>, vector<2x32xf32>,
    %c0_51 = arith.constant 0 : index
    %c32 = arith.constant 32 : index
    %102 = vector.load %arg6[%c0_51, %c32] : memref<2x128xf32, #tpu.memory_space<vmem>>, vector<2x32xf32>
    tpu.vector_store %arg6[%c0_51, %c32], %32 {strides = array<i32>} : memref<2x128xf32, #tpu.memory_space<vmem>>, vector<2x32xf32>,
    %c0_52 = arith.constant 0 : index
    %c64_53 = arith.constant 64 : index
    %103 = vector.load %arg6[%c0_52, %c64_53] : memref<2x128xf32, #tpu.memory_space<vmem>>, vector<2x32xf32>
    tpu.vector_store %arg6[%c0_52, %c64_53], %37 {strides = array<i32>} : memref<2x128xf32, #tpu.memory_space<vmem>>, vector<2x32xf32>,
    %c0_54 = arith.constant 0 : index
    %c96_55 = arith.constant 96 : index
    %104 = vector.load %arg6[%c0_54, %c96_55] : memref<2x128xf32, #tpu.memory_space<vmem>>, vector<2x4xf32>
    tpu.vector_store %arg6[%c0_54, %c96_55], %42 {strides = array<i32>} : memref<2x128xf32, #tpu.memory_space<vmem>>, vector<2x4xf32>,
    %cst_56 = arith.constant 0.000000e+00 : f32
    %105 = vector.broadcast %cst_56 : f32 to vector<2x28xf32>
    %c0_57 = arith.constant 0 : index
    %c100 = arith.constant 100 : index
    %106 = vector.load %arg6[%c0_57, %c100] : memref<2x128xf32, #tpu.memory_space<vmem>>, vector<2x28xf32>
    tpu.vector_store %arg6[%c0_57, %c100], %105 {strides = array<i32>} : memref<2x128xf32, #tpu.memory_space<vmem>>, vector<2x28xf32>,
    return
  }
}

</mosaic_0001>

<bundles_post_ra>
// kernel: gcnvae_forward.1
= control target key start
LH: loop header
LB: loop body
LE: loop exit
PB: predicated region body
PF: predicated region fallthrough
CT: control target
= control target key end

     0   :  { %v1466_v1 = vmov 0.0   ;;  %vm1467_vm0 = vmmov 0   ;;  %s1796_s0 = inlined_call_operand.vmem [shape: f32[2,120], index: 0, kind: input, shape index: {}]   ;;  %s1797_s1 = inlined_call_operand.vmem [shape: f32[2,32], index: 1, kind: input, shape index: {}]   ;;  %s1798_s2 = inlined_call_operand.vmem [shape: f32[2,16,16], index: 2, kind: input, shape index: {}]   ;;  %s1799_s3 = inlined_call_operand.vmem [shape: f32[328,64], index: 3, kind: input, shape index: {}]   ;;  %s1800_s4 = inlined_call_operand.vmem [shape: f32[1,256], index: 4, kind: input, shape index: {}]   ;;  %s1801_s5 = inlined_call_operand.hbm [shape: f32[2,16,16], index: 5, kind: output, shape index: {0}]   ;;  %s1802_s6 = inlined_call_operand.vmem [shape: f32[2,128], index: 6, kind: output, shape index: {1}]  }
   0x1   :  { %v43_v0 = vld [vmem:[%s1799_s3 + $0x70] sm:$0xff]  ;;  %1286 = vmatprep.subr.mxu0 %v1466_v1  ;;  %v42_v2 = vld [vmem:[%s1799_s3 + $0x68] sm:$0xff]  ;;  %1316 = vmatprep.mubr.msk.f32.mxu0 %vm1467_vm0, %v1466_v1  ;;  %v41_v3 = vld [vmem:[%s1799_s3 + $0x60] sm:$0xff] }
   0x2   :  { %1287 = vmatpush3.msra.mxu0 %v43_v0  ;;  %1319 = vmatprep.subr.mxu1 %v1466_v1  ;;  %v40_v4 = vld [vmem:[%s1799_s3 + $0x58] sm:$0xff]  ;;  %v135_v5 = vld [vmem:[%s1799_s3 + $0xb0] sm:$0xff]  ;;  %v134_v6 = vld [vmem:[%s1799_s3 + $0xa8] sm:$0xff] }
   0x3   :  { %1288 = vmatprep.subr.mxu0 %v1466_v1  ;;  %1335 = vmatprep.mubr.msk.f32.mxu1 %vm1467_vm0, %v1466_v1  ;;  %v39_v7 = vld [vmem:[%s1799_s3 + $0x50] sm:$0xff]  ;;  %v133_v8 = vld [vmem:[%s1799_s3 + $0xa0] sm:$0xff] }
   0x4   :  { %1289 = vmatpush3.msra.mxu0 %v42_v2  ;;  %1320 = vmatpush3.msra.mxu1 %v135_v5 }
   0x5   :  { %1290 = vmatprep.subr.mxu0 %v1466_v1  ;;  %1321 = vmatprep.subr.mxu1 %v1466_v1 }
   0x6   :  { %1291 = vmatpush3.msra.mxu0 %v41_v3 }
   0x7   :  { %1292 = vmatprep.subr.mxu0 %v1466_v1 }
   0x8   :  { %12 = vsyncpa [#allocation3], 0  ;;  %1293 = vmatpush3.msra.mxu0 %v40_v4  ;;  %1322 = vmatpush3.msra.mxu1 %v134_v6  ;;  %v38_v9 = vld [vmem:[%s1799_s3 + $0x48] sm:$0xff]  ;;  %v132_v10 = vld [vmem:[%s1799_s3 + $0x98] sm:$0xff]  ;;  %vm51_vm1 = vcmask 982016   ;;  %s1468_s22 = smov 64  }
   0x9   :  { %1294 = vmatprep.subr.mxu0 %v1466_v1  ;;  %1323 = vmatprep.subr.mxu1 %v1466_v1  ;;  %v37_v11 = vld [vmem:[%s1799_s3 + $0x40] sm:$0xff]  ;;  %v131_v12 = vld [vmem:[%s1799_s3 + $0x90] sm:$0xff]  ;;  %v36_v13 = vld [vmem:[%s1799_s3 + $0x38] sm:$0xff]  ;;  %vm139_vm3 = vcmask 523264   ;;  %s1469_s11 = smov 32   ;;  %vm223_vm5 = vcmask 261120  }
   0xa   :  { %1295 = vmatpush3.msra.mxu0 %v39_v7  ;;  %1324 = vmatpush3.msra.mxu1 %v133_v8  ;;  %v35_v14 = vld [vmem:[%s1799_s3 + $0x30] sm:$0xff]  ;;  %v34_v15 = vld [vmem:[%s1799_s3 + $0x28] sm:$0xff]  ;;  %v33_v16 = vld [vmem:[%s1799_s3 + $0x20] sm:$0xff]  ;;  %s1470_s10 = smov 92   ;;  %vm1156_vm6 = vcmask 254976   ;;  %vm583_vm7 = vcmask 130048   ;;  %v550_v8 = vlaneseq }
   0xb   :  { %1296 = vmatprep.subr.mxu0 %v1466_v1  ;;  %1325 = vmatprep.subr.mxu1 %v1466_v1  ;;  %v32_v17 = vld [vmem:[%s1799_s3 + $0x18] sm:$0xff]  ;;  %v31_v18 = vld [vmem:[%s1799_s3 + $0x10] sm:$0xff]  ;;  %v30_v19 = vld [vmem:[%s1799_s3 + $0x8] sm:$0xff]  ;;  %s1474_s23 = smov 52   ;;  %s1475_s24 = smov 68   ;;  %vm852_vm13 = vcmask 64512  }
   0xc   :  { %1297 = vmatpush3.msra.mxu0 %v38_v9  ;;  %1326 = vmatpush3.msra.mxu1 %v132_v10  ;;  %v29_v20 = vld [vmem:[%s1799_s3] sm:$0xff]  ;;  %v130_v22 = vld [vmem:[%s1799_s3 + $0x88] sm:$0xff]  ;;  %v128_v24 = vld [vmem:[%s1799_s3 + $0x78] sm:$0xff]  ;;  %v551_v10 = vshrl.u32 %v550_v8, 7  ;;  %s1476_s25 = smov 96   ;;  %vm1162_vm14 = vcmask 517376  }
   0xd   :  { %1298 = vmatprep.subr.mxu0 %v1466_v1  ;;  %1327 = vmatprep.subr.mxu1 %v1466_v1  ;;  %v23_v21 = vld [vmem:[%s1796_s0] sm:$0x3]  ;;  %v219_v30 = vld [vmem:[%s1799_s3 + $0xd0] sm:$0xff]  ;;  %v218_v32 = vld [vmem:[%s1799_s3 + $0xc8] sm:$0xff]  ;;  %vm1167_vm15 = vcmask 779776   ;;  %s1477_s12 = smov [#allocation2]  }
   0xe   :  { %1299 = vmatpush3.msra.mxu0 %v37_v11  ;;  %1328 = vmatpush3.msra.mxu1 %v131_v12  ;;  %v129_v23 = vld [vmem:[%s1799_s3 + $0x80] sm:$0xff]  ;;  %v216_v34 = vld [vmem:[%s1799_s3 + $0xb8] sm:$0xff]  ;;  %v386_v35 = vld [vmem:[%s1799_s3 + $0x110] sm:$0xff]  ;;  %s1182_s13 = sshll.u32 %s1477_s12, 4  ;;  %s1183_s13 = int_to_ptr.vmem [resolvable:$true] %s1182_s13 }
   0xf   :  { %1300 = vmatprep.subr.mxu0 %v1466_v1  ;;  %1329 = vmatprep.subr.mxu1 %v1466_v1  ;;  %v1197_v25 = vld [vmem:[%s1800_s4] ss:$0 sm:$0xff]  ;;  %v385_v36 = vld [vmem:[%s1799_s3 + $0x108] sm:$0xff]  ;;  %v300_v42 = vld [vmem:[%s1799_s3 + $0xf0] sm:$0xff]  ;;  %p1449_p1 = scmp.lt.s32.totalorder %s1183_s13, %s1183_s13 }
  0x10   :  { %1301 = vmatpush3.msra.mxu0 %v36_v13  ;;  %1330 = vmatpush3.msra.mxu1 %v130_v22  ;;  %v217_v33 = vld [vmem:[%s1799_s3 + $0xc0] sm:$0xff]  ;;  %v299_v44 = vld [vmem:[%s1799_s3 + $0xe8] sm:$0xff]  ;;  %v297_v46 = vld [vmem:[%s1799_s3 + $0xd8] sm:$0xff] }
  0x11   :  { %1302 = vmatprep.subr.mxu0 %v1466_v1  ;;  %1331 = vmatprep.subr.mxu1 %v1466_v1  ;;  %v298_v45 = vld [vmem:[%s1799_s3 + $0xe0] sm:$0xff]  ;;  %v383_v48 = vld [vmem:[%s1799_s3 + $0xf8] sm:$0xff]  ;;  %v466_v49 = vld [vmem:[%s1799_s3 + $0x130] sm:$0xff] }
  0x12   :  { %1303 = vmatpush3.msra.mxu0 %v35_v14  ;;  %1332 = vmatpush3.msra.mxu1 %v129_v23  ;;  %v384_v47 = vld [vmem:[%s1799_s3 + $0x100] sm:$0xff]  ;;  %v465_v50 = vld [vmem:[%s1799_s3 + $0x128] sm:$0xff]  ;;  %v463_v52 = vld [vmem:[%s1799_s3 + $0x118] sm:$0xff]  ;;  %v571_v14 = vsub.s32 0, %v551_v10 }
  0x13   :  { %1304 = vmatprep.subr.mxu0 %v1466_v1  ;;  %1333 = vmatprep.subr.mxu1 %v1466_v1  ;;  %v464_v51 = vld [vmem:[%s1799_s3 + $0x120] sm:$0xff]  ;;  %v27_v5 = vld [vmem:[%s1798_s2 + $0x10] sm:$0xff] }
  0x14   :  { %1305 = vmatpush3.msra.mxu0 %v34_v15  ;;  %1334 = vmatpush3.msra.mxu1 %v128_v24  ;;  %v1696_v53 = vld [vmem:[%s1800_s4 + $0x1] ss:$0 sm:$0xff]  ;;  %s1444_s4 = scalar_lea.vmem %s1183_s13, 512 }
  0x15   :  { %1306 = vmatprep.subr.mxu0 %v1466_v1  ;;  %1338 = vmatprep.subr.mxu1 %v1466_v1  ;;  %v24_v63 = vld [vmem:[%s1797_s1] sm:$0x3]  ;;  %s1472_s1 = smov 24   ;;  %p1445_p0 = scmp.ne.s32.totalorder %s1183_s13, %s1444_s4 }
  0x16   :  { %1307 = vmatpush3.msra.mxu0 %v33_v16  ;;  %136 = vrot.lane.b32.xlu0 %v1197_v25, %s1468_s22  ;;  %v25_v4 = vld [vmem:[%s1798_s2] sm:$0xff]  ;;  %p1450_p2 = scmp.lt.s32.totalorder %s1444_s4, %s1444_s4 }
  0x17   :  { %1308 = vmatprep.subr.mxu0 %v1466_v1  ;;  %467 = vrot.lane.b32.xlu1 %v1696_v53, %s1470_s10 }
  0x18   :  { %1309 = vmatpush3.msra.mxu0 %v32_v17  ;;  %p1451_p3 = por %p1450_p2, %p1449_p1 }
  0x19   :  { %1310 = vmatprep.subr.mxu0 %v1466_v1 }
  0x1a   :  { %1311 = vmatpush3.msra.mxu0 %v31_v18  ;;  %220 = vrot.lane.b32.xlu0 %v1197_v25, %s1469_s11  ;;  %v620_v18 = vsub.s32 1, %v551_v10  ;;  %p1452_p4 = pnand %p1451_p3, %p1445_p0 }
  0x1b   :  { %1312 = vmatprep.subr.mxu0 %v1466_v1 }
  0x1c   :  { %1313 = vmatpush3.msra.mxu0 %v30_v19 }
  0x1d   :  { %1314 = vmatprep.subr.mxu0 %v1466_v1 }
  0x1e   :  { %1315 = vmatpush3.msra.mxu0 %v29_v20  ;;  %v1471_v20 = vmov 1966171168  }
  0x1f   :  { %1317 = vmatmul.mubr.msk.f32.vlgmr.msra.gmra.mxu0 %vm51_vm1, %v23_v21  ;;  %1360 = vmatprep.subr.mxu0 %v1466_v1  ;;  %v548_v21 = vunpack.c.l.s4 %v1471_v20  ;;  %vm1175_vm1 = vcmask 1042208  }
  0x20   :  { %1368 = vmatprep.mubr.msk.f32.mxu0 %vm1467_vm0, %v1466_v1  ;;  %1361 = vmatpush3.msra.mxu0 %v386_v35 }
  0x21   :  { %1362 = vmatprep.subr.mxu0 %v1466_v1  ;;  %v549_v22 = vunpack.c.0.s8 %v548_v21  ;;  %v851_v21 = vld [vmem:[%s1799_s3 + $0x140] sm:$0xff] }
  0x22   :  { %1363 = vmatpush3.msra.mxu0 %v385_v36 }
  0x23   :  { %1364 = vmatprep.subr.mxu0 %v1466_v1  ;;  %v552_v23 = vsub.s32 %v549_v22, %v551_v10 }
  0x24   :  { %1365 = vmatpush3.msra.mxu0 %v384_v47 }
  0x25   :  { %1366 = vmatprep.subr.mxu0 %v1466_v1 }
  0x26   :  { %1367 = vmatpush3.msra.mxu0 %v383_v48 }
  0x88   :  { %v137_v37 = vpop.permute.xlu0 %136 }
  0x89   :  { %v468_v9 = vpop.permute.xlu1 %467 }
  0x8c   :  { %v221_v54 = vpop.permute.xlu0 %220 }
  0xdf   :  { %v121_v26 = vpop.f32.mrf.mxu0 }
  0xe0   :  { %v122_v27 = vadd.f32 %v1197_v25, %v121_v26 }
  0xe1   :  { %v1318_v28 = vpop.f32.mrf.mxu0 }
  0xe2   :  { %vm125_vm2 = vcmp.ge.f32.partialorder %v122_v27, 0.0  ;;  %v126_v29 = vmul.f32 0.01, %v122_v27 }
  0xe4   :  { %v127_v31 = vsel %vm125_vm2, %v122_v27, %v126_v29 }
  0xe5   :  { %1336 = vmatmul.mubr.msk.f32.vlgmr.msra.gmra.mxu1 %vm139_vm3, %v127_v31  ;;  %v1728_v31 = vld [vmem:[%s1798_s2 + $0x18] sm:$0xff] }
  0xe6   :  { %1339 = vmatpush3.msra.mxu1 %v219_v30  ;;  %1346 = vmatprep.mubr.msk.f32.mxu1 %vm1467_vm0, %v1466_v1 }
  0xe7   :  { %1340 = vmatprep.subr.mxu1 %v1466_v1 }
  0xe8   :  { %1341 = vmatpush3.msra.mxu1 %v218_v32 }
  0xe9   :  { %1342 = vmatprep.subr.mxu1 %v1466_v1 }
  0xea   :  { %1343 = vmatpush3.msra.mxu1 %v217_v33 }
  0xeb   :  { %1344 = vmatprep.subr.mxu1 %v1466_v1 }
  0xec   :  { %1345 = vmatpush3.msra.mxu1 %v216_v34  ;;  %v1735_v34 = vld [vmem:[%s1798_s2 + $0x8] sm:$0xff]  ;;  %s1473_s2 = smov 120  }
  0xed   :  { %1349 = vmatprep.subr.mxu1 %v1466_v1 }
 0x1a5   :  { %v209_v38 = vpop.f32.mrf.mxu1 }
 0x1a6   :  { %v210_v39 = vadd.f32 %v209_v38, %v137_v37 }
 0x1a7   :  { %v1337_v40 = vpop.f32.mrf.mxu1 }
 0x1a8   :  { %vm213_vm4 = vcmp.ge.f32.partialorder %v210_v39, 0.0  ;;  %v214_v41 = vmul.f32 0.01, %v210_v39 }
 0x1aa   :  { %v215_v43 = vsel %vm213_vm4, %v210_v39, %v214_v41 }
 0x1ab   :  { %1347 = vmatmul.mubr.msk.f32.vlgmr.msra.gmra.mxu1 %vm223_vm5, %v215_v43 }
 0x1ac   :  { %1350 = vmatpush3.msra.mxu1 %v300_v42  ;;  %1357 = vmatprep.mubr.msk.f32.mxu1 %vm1467_vm0, %v1466_v1 }
 0x1ad   :  { %1351 = vmatprep.subr.mxu1 %v1466_v1 }
 0x1ae   :  { %1352 = vmatpush3.msra.mxu1 %v299_v44 }
 0x1af   :  { %1353 = vmatprep.subr.mxu1 %v1466_v1 }
 0x1b0   :  { %1354 = vmatpush3.msra.mxu1 %v298_v45 }
 0x1b1   :  { %1355 = vmatprep.subr.mxu1 %v1466_v1 }
 0x1b2   :  { %1356 = vmatpush3.msra.mxu1 %v297_v46 }
 0x1b3   :  { %1358 = vmatmul.mubr.msk.f32.vlgmr.msra.gmra.mxu1 %vm223_vm5, %v215_v43  ;;  %1371 = vmatprep.subr.mxu1 %v1466_v1 }
 0x1b4   :  { %1379 = vmatprep.mubr.msk.f32.mxu1 %vm1467_vm0, %v1466_v1  ;;  %1372 = vmatpush3.msra.mxu1 %v466_v49  ;;  %vm1173_vm0 = vcmask 812800  }
 0x1b5   :  { %1373 = vmatprep.subr.mxu1 %v1466_v1 }
 0x1b6   :  { %1374 = vmatpush3.msra.mxu1 %v465_v50 }
 0x1b7   :  { %1375 = vmatprep.subr.mxu1 %v1466_v1 }
 0x1b8   :  { %1376 = vmatpush3.msra.mxu1 %v464_v51 }
 0x1b9   :  { %1377 = vmatprep.subr.mxu1 %v1466_v1 }
 0x1ba   :  { %1378 = vmatpush3.msra.mxu1 %v463_v52 }
 0x26b   :  { %v293_v55 = vpop.f32.mrf.mxu1 }
 0x26c   :  { %v294_v56 = vadd.f32 %v293_v55, %v221_v54 }
 0x26d   :  { %v1348_v57 = vpop.f32.mrf.mxu1 }
 0x26e   :  { %1369 = vmatmul.mubr.msk.f32.vlgmr.msra.gmra.mxu0 %vm223_vm5, %v294_v56  ;;  %1157 = vst.msk [vmem:[%s1802_s6] sm:$0x3] %vm1156_vm6, %v294_v56 }
 0x26f   :  { %1386 = vmatprep.mubr.msk.f32.mxu0 %vm583_vm7, %v25_v4 }
 0x273   :  { %v374_v58 = vpop.f32.mrf.mxu1 }
 0x274   :  { %v1704_v59 = vadd.f32 %v1696_v53, %v374_v58 }
 0x275   :  { %v1359_v60 = vpop.f32.mrf.mxu1 }
 0x276   :  { %v378_v61 = vmul.f32 0.5, %v1704_v59 }
 0x278   :  { %v379_v62 = vmul.f32 1.442695, %v378_v61 }
 0x27a   :  { %1426 = vpow2.f32 %v379_v62 }
 0x287   :  { %v1427_v0 = vpop.eup %1426 }
 0x288   :  { %v381_v2 = vmul.f32 %v1427_v0, %v24_v63 }
 0x28a   :  { %v1710_v3 = vadd.f32 %v381_v2, %v294_v56 }
 0x28c   :  { %1380 = vmatmul.mubr.msk.f32.vlgmr.msra.gmra.mxu1 %vm223_vm5, %v1710_v3 }
 0x28d   :  { %1393 = vmatprep.mubr.msk.f32.mxu1 %vm583_vm7, %v27_v5 }
 0x32e   :  { %v1722_v6 = vpop.f32.mrf.mxu0 }
 0x330   :  { %v1370_v7 = vpop.f32.mrf.mxu0 }
 0x34c   :  { %v539_v11 = vpop.f32.mrf.mxu1 }
 0x34d   :  { %v540_v12 = vadd.f32 %v539_v11, %v468_v9 }
 0x34e   :  { %v1381_v13 = vpop.f32.mrf.mxu1 }
 0x34f   :  { %vm543_vm8 = vcmp.ge.f32.partialorder %v540_v12, 0.0  ;;  %v544_v15 = vmul.f32 0.01, %v540_v12 }
 0x351   :  { %v545_v16 = vsel %vm543_vm8, %v540_v12, %v544_v15 }
 0x352   :  { %v610_v17 = vrot.slane %v545_v16, %v571_v14  ;;  %v621_v19 = vrot.slane %v545_v16, %v620_v18  ;;  %v553_v24 = vrot.slane %v545_v16, %v552_v23 }
 0x354   :  { %612 = vbcast.lane.b32.xlu0 %v610_v17, 256  ;;  %616 = vbcast.lane.b32.xlu1 %v610_v17, 264  ;;  %v554_v25 = vcombine.high %v553_v24, %v553_v24  ;;  %v561_v26 = vrot.slane %v553_v24, %v552_v23 }
 0x356   :  { %v572_v27 = vrot.slane %v561_v26, %v571_v14  ;;  %v568_v28 = vrot.slane %v554_v25, %v552_v23  ;;  %v850_v23 = vld [vmem:[%s1799_s3 + $0x138] sm:$0xff] }
 0x358   :  { %623 = vbcast.lane.b32.xlu0 %v621_v19, 256  ;;  %627 = vbcast.lane.b32.xlu1 %v621_v19, 264  ;;  %v579_v29 = vmul.f32 %v572_v27, %v25_v4  ;;  %v576_v30 = vrot.slane %v568_v28, %v571_v14  ;;  %v580_v36 = vmul.f32 %v572_v27, %v1735_v34 }
 0x35a   :  { %v584_v32 = vsel %vm583_vm7, %v579_v29, 0.0  ;;  %v582_v33 = vmul.f32 %v576_v30, %v1728_v31  ;;  %v587_v37 = vsel %vm583_vm7, %v580_v36, 0.0  ;;  %v581_v38 = vmul.f32 %v576_v30, %v27_v5 }
 0x35c   :  { %653 = vrot.lane.b32.xlu1 %v1696_v53, %s1472_s1  ;;  %v593_v35 = vsel %vm583_vm7, %v582_v33, 0.0  ;;  %v590_v39 = vsel %vm583_vm7, %v581_v38, 0.0 }
 0x377   :  { %585 = vadd.xlane.f32.xlu0 %v584_v32 }
 0x37b   :  { %594 = vadd.xlane.f32.xlu0 %v593_v35 }
 0x380   :  { %588 = vadd.xlane.f32.xlu1 %v587_v37 }
 0x384   :  { %591 = vadd.xlane.f32.xlu1 %v590_v39 }
 0x3c6   :  { %v613_v40 = vpop.permute.xlu0 %612  ;;  %v617_v41 = vpop.permute.xlu1 %616 }
 0x3c7   :  { %v629_v42 = vmul.f32 %v1696_v53, %v613_v40  ;;  %v630_v43 = vmul.f32 %v1696_v53, %v617_v41 }
 0x3c9   :  { %639 = vrot.lane.b32.xlu0 %v630_v43, %s1473_s2  ;;  %637 = vrot.lane.b32.xlu1 %v629_v42, %s1473_s2 }
 0x3ca   :  { %v624_v44 = vpop.permute.xlu0 %623  ;;  %v628_v45 = vpop.permute.xlu1 %627 }
 0x3cb   :  { %v631_v46 = vmul.f32 %v1696_v53, %v624_v44  ;;  %v632_v47 = vmul.f32 %v1696_v53, %v628_v45 }
 0x3cd   :  { %643 = vrot.lane.b32.xlu0 %v632_v47, %s1473_s2  ;;  %641 = vrot.lane.b32.xlu1 %v631_v46, %s1473_s2 }
 0x3ce   :  { %v654_v48 = vpop.permute.xlu1 %653 }
 0x400   :  { %v586_v49 = vpop.xlane.xlu0 %585 }
 0x401   :  { %v603_v54 = vmul.f32 %v1696_v53, %v586_v49 }
 0x404   :  { %v595_v51 = vpop.xlane.xlu0 %594 }
 0x405   :  { %v606_v61 = vmul.f32 %v1696_v53, %v595_v51 }
 0x409   :  { %v589_v50 = vpop.xlane.xlu1 %588 }
 0x40a   :  { %v604_v55 = vmul.f32 %v1696_v53, %v589_v50 }
 0x40d   :  { %v592_v52 = vpop.xlane.xlu1 %591 }
 0x40e   :  { %v605_v62 = vmul.f32 %v1696_v53, %v592_v52 }
 0x43b   :  { %v640_v56 = vpop.permute.xlu0 %639  ;;  %v638_v57 = vpop.permute.xlu1 %637 }
 0x43c   :  { %v650_v58 = vadd.f32 %v640_v56, %v604_v55  ;;  %v649_v60 = vadd.f32 %v638_v57, %v603_v54 }
 0x43e   :  { %v657_v63 = vadd.f32 %v654_v48, %v650_v58  ;;  %v656_v0 = vadd.f32 %v654_v48, %v649_v60 }
 0x43f   :  { %v644_v2 = vpop.permute.xlu0 %643  ;;  %v642_v4 = vpop.permute.xlu1 %641 }
 0x440   :  { %v652_v5 = vadd.f32 %v644_v2, %v606_v61  ;;  %v651_v7 = vadd.f32 %v642_v4, %v605_v62  ;;  %vm661_vm9 = vcmp.ge.f32.partialorder %v657_v63, 0.0  ;;  %v665_v8 = vmul.f32 0.01, %v657_v63 }
 0x441   :  { %vm660_vm10 = vcmp.ge.f32.partialorder %v656_v0, 0.0  ;;  %v664_v9 = vmul.f32 0.01, %v656_v0 }
 0x442   :  { %v659_v10 = vadd.f32 %v654_v48, %v652_v5  ;;  %v658_v11 = vadd.f32 %v654_v48, %v651_v7  ;;  %v669_v12 = vsel %vm661_vm9, %v657_v63, %v665_v8 }
 0x443   :  { %676 = vrot.lane.b32.xlu0 %v669_v12, %s1474_s23  ;;  %v668_v13 = vsel %vm660_vm10, %v656_v0, %v664_v9 }
 0x444   :  { %674 = vrot.lane.b32.xlu1 %v668_v13, %s1474_s23  ;;  %vm663_vm11 = vcmp.ge.f32.partialorder %v659_v10, 0.0  ;;  %v667_v14 = vmul.f32 0.01, %v659_v10  ;;  %vm662_vm12 = vcmp.ge.f32.partialorder %v658_v11, 0.0  ;;  %v666_v15 = vmul.f32 0.01, %v658_v11 }
 0x446   :  { %v671_v16 = vsel %vm663_vm11, %v659_v10, %v667_v14  ;;  %v670_v17 = vsel %vm662_vm12, %v658_v11, %v666_v15 }
 0x447   :  { %765 = vrot.lane.b32.xlu0 %v671_v16, %s1474_s23 }
 0x448   :  { %763 = vrot.lane.b32.xlu1 %v670_v17, %s1474_s23 }
 0x44b   :  { %1049 = vrot.lane.b32.xlu0 %v1696_v53, %s1475_s24 }
 0x44c   :  { %387 = vrot.lane.b32.xlu1 %v1696_v53, %s1476_s25 }
 0x44f   :  { %1159 = vrot.lane.b32.xlu0 %v1704_v59, %s1469_s11 }
 0x4b5   :  { %v677_v18 = vpop.permute.xlu0 %676 }
 0x4b6   :  { %v675_v19 = vpop.permute.xlu1 %674  ;;  %1382 = vmatprep.subr.mxu0 %v677_v18 }
 0x4b7   :  { %1383 = vmatpush3.msra.mxu0 %v677_v18 }
 0x4b8   :  { %1384 = vmatprep.subr.mxu0 %v675_v19 }
 0x4b9   :  { %v766_v20 = vpop.permute.xlu0 %765  ;;  %1385 = vmatpush3.msra.mxu0 %v675_v19 }
 0x4ba   :  { %1387 = vmatmul.mubr.msk.f32.vlgmr.msra.gmra.mxu0 %vm583_vm7, %v1735_v34  ;;  %1389 = vmatprep.subr.mxu1 %v766_v20  ;;  %v764_v53 = vpop.permute.xlu1 %763 }
 0x4bb   :  { %1390 = vmatpush3.msra.mxu1 %v766_v20  ;;  %1398 = vmatprep.mubr.msk.f32.mxu0 %vm852_vm13, %v675_v19 }
 0x4bc   :  { %1391 = vmatprep.subr.mxu1 %v764_v53  ;;  %1396 = vmatprep.subr.mxu0 %v851_v21 }
 0x4bd   :  { %v1050_v59 = vpop.permute.xlu0 %1049  ;;  %1392 = vmatpush3.msra.mxu1 %v764_v53  ;;  %1397 = vmatpush3.msra.mxu0 %v851_v21 }
 0x4be   :  { %1394 = vmatmul.mubr.msk.f32.vlgmr.msra.gmra.mxu1 %vm583_vm7, %v1728_v31  ;;  %1399 = vmatmul.mubr.msk.f32.vlgmr.msra.gmra.mxu0 %vm852_vm13, %v677_v18  ;;  %v388_v44 = vpop.permute.xlu1 %387 }
 0x4bf   :  { %1401 = vmatprep.mubr.msk.f32.mxu0 %vm852_vm13, %v764_v53  ;;  %1404 = vmatprep.subr.mxu1 %v850_v23  ;;  %v460_v45 = vadd.f32 %v1722_v6, %v388_v44 }
 0x4c0   :  { %1405 = vmatpush3.msra.mxu1 %v850_v23 }
 0x4c1   :  { %v1160_v22 = vpop.permute.xlu0 %1159 }
 0x4c2   :  { %1163 = vst.msk [vmem:[%s1802_s6] sm:$0x3] %vm1162_vm14, %v1160_v22  ;;  %1402 = vmatmul.mubr.msk.f32.gmra.mxu0 %vm852_vm13, %v766_v20 }
 0x57a   :  { %v1388_v24 = vpop.f32.mrf.mxu0 }
 0x57c   :  { %v752_v25 = vpop.f32.mrf.mxu0 }
 0x57d   :  { %1406 = vmatprep.mubr.msk.f32.mxu1 %vm852_vm13, %v752_v25 }
 0x57e   :  { %v1395_v26 = vpop.f32.mrf.mxu1  ;;  %1407 = vmatmul.mubr.msk.f32.vlgmr.msra.gmra.mxu1 %vm852_vm13, %v1388_v24  ;;  %v1400_v28 = vpop.f32.mrf.mxu0 }
 0x580   :  { %v841_v27 = vpop.f32.mrf.mxu1  ;;  %v927_v29 = vpop.f32.mrf.mxu0 }
 0x581   :  { %1409 = vmatprep.mubr.msk.f32.mxu1 %vm852_vm13, %v841_v27 }
 0x582   :  { %1410 = vmatmul.mubr.msk.f32.gmra.mxu1 %vm852_vm13, %v1395_v26  ;;  %v1403_v31 = vpop.f32.mrf.mxu0 }
 0x584   :  { %v937_v37 = vpop.f32.mrf.mxu0 }
 0x63e   :  { %v1408_v30 = vpop.f32.mrf.mxu1 }
 0x63f   :  { %v1030_v35 = vadd.f32 %v1408_v30, %v1400_v28 }
 0x640   :  { %v1024_v32 = vpop.f32.mrf.mxu1 }
 0x641   :  { %v1025_v33 = vadd.f32 %v1024_v32, %v927_v29  ;;  %v1053_v40 = vadd.f32 %v1050_v59, %v1030_v35 }
 0x642   :  { %v1411_v34 = vpop.f32.mrf.mxu1 }
 0x643   :  { %v1052_v36 = vadd.f32 %v1050_v59, %v1025_v33  ;;  %v1040_v41 = vadd.f32 %v1411_v34, %v1403_v31 }
 0x644   :  { %v1034_v38 = vpop.f32.mrf.mxu1 }
 0x645   :  { %v1035_v39 = vadd.f32 %v1034_v38, %v937_v37  ;;  %1056 = vxpose.xlu0.b32.start [1/2] (short) (narrow) %v1052_v36, 16  ;;  %v1055_v43 = vadd.f32 %v1050_v59, %v1040_v41 }
 0x647   :  { %v1054_v42 = vadd.f32 %v1050_v59, %v1035_v39 }
 0x649   :  { %1057 = vxpose.xlu0.b32.end [2/2] (short) (narrow) %v1053_v40, 16  ;;  %1088 = vxpose.xlu1.b32.start [1/2] (short) (narrow) %v1054_v42, 16 }
 0x64d   :  { %1089 = vxpose.xlu1.b32.end [2/2] (short) (narrow) %v1055_v43, 16 }
 0x66b   :  { %1164 = vrot.lane.b32.xlu1 %v1710_v3, %s1468_s22 }
 0x672   :  { %1170 = vrot.lane.b32.xlu0 %v460_v45, %s1476_s25 }
 0x6c1   :  { %v1072_v46 = vpop.trf.xlu0 }
 0x6c2   :  { %v1120_v47 = vadd.f32 %v1072_v46, %v1052_v36 }
 0x6c4   :  { %v1219_v48 = vmul.f32 -0.5, %v1120_v47 }
 0x6c5   :  { %v1073_v49 = vpop.trf.xlu0  ;;  %v1104_v50 = vpop.trf.xlu1 }
 0x6c6   :  { %v1132_v51 = vmul.f32 1.442695, %v1219_v48  ;;  %v1121_v52 = vadd.f32 %v1073_v49, %v1053_v40  ;;  %v1122_v54 = vadd.f32 %v1104_v50, %v1054_v42 }
 0x6c8   :  { %1428 = vpow2.f32 %v1132_v51  ;;  %v1220_v55 = vmul.f32 -0.5, %v1121_v52  ;;  %v1221_v56 = vmul.f32 -0.5, %v1122_v54 }
 0x6c9   :  { %v1105_v57 = vpop.trf.xlu1 }
 0x6ca   :  { %v1134_v58 = vmul.f32 1.442695, %v1220_v55  ;;  %v1136_v60 = vmul.f32 1.442695, %v1221_v56  ;;  %v1123_v3 = vadd.f32 %v1105_v57, %v1055_v43 }
 0x6cc   :  { %1430 = vpow2.f32 %v1134_v58  ;;  %v1222_v61 = vmul.f32 -0.5, %v1123_v3 }
 0x6cd   :  { %1432 = vpow2.f32 %v1136_v60 }
 0x6ce   :  { %v1138_v6 = vmul.f32 1.442695, %v1222_v61 }
 0x6d0   :  { %1434 = vpow2.f32 %v1138_v6 }
 0x6d5   :  { %v1429_v62 = vpop.eup %1428 }
 0x6d6   :  { %v1140_v63 = vadd.f32 1.0, %v1429_v62 }
 0x6d8   :  { %1436 = vrcp.f32 %v1140_v63 }
 0x6d9   :  { %v1431_v0 = vpop.eup %1430 }
 0x6da   :  { %v1433_v2 = vpop.eup %1432  ;;  %v1141_v4 = vadd.f32 1.0, %v1431_v0 }
 0x6db   :  { %v1142_v5 = vadd.f32 1.0, %v1433_v2 }
 0x6dc   :  { %1438 = vrcp.f32 %v1141_v4 }
 0x6dd   :  { %v1435_v7 = vpop.eup %1434  ;;  %1440 = vrcp.f32 %v1142_v5  ;;  %v1165_v8 = vpop.permute.xlu1 %1164 }
 0x6de   :  { %v1143_v9 = vadd.f32 1.0, %v1435_v7  ;;  %1168 = vst.msk [vmem:[%s1802_s6] sm:$0x3] %vm1167_vm15, %v1165_v8 }
 0x6e0   :  { %1442 = vrcp.f32 %v1143_v9 }
 0x6e4   :  { %v1171_v10 = vpop.permute.xlu0 %1170 }
 0x6e5   :  { %v1437_v11 = vpop.eup %1436  ;;  %1174 = vst.msk [vmem:[%s1802_s6] sm:$0x3] %vm1173_vm0, %v1171_v10 }
 0x6e6   :  { %1152 = vst.msk [vmem:[#allocation2] sm:$0xff] %vm583_vm7, %v1437_v11 }
 0x6e7   :  { %1176 = vst.msk [vmem:[%s1802_s6] sm:$0x3] %vm1175_vm1, %v1466_v1 }
 0x6e9   :  { %v1439_v12 = vpop.eup %1438 }
 0x6ea   :  { %v1441_v13 = vpop.eup %1440  ;;  %1153 = vst.msk [vmem:[#allocation2 + $0x8] sm:$0xff] %vm583_vm7, %v1439_v12 }
 0x6eb   :  { %1154 = vst.msk [vmem:[#allocation2 + $0x10] sm:$0xff] %vm583_vm7, %v1441_v13 }
 0x6ed   :  { %v1443_v14 = vpop.eup %1442 }
 0x6ee   :  { %1155 = vst.msk [vmem:[#allocation2 + $0x18] sm:$0xff] %vm583_vm7, %v1443_v14 }
 0x6ef   :  { %1455 = shalt.err (!%p1452_p4)
}
 0x6f0   :  { %s1478_s6 = smov 128   ;;  %s1479_s14 = smov 8  }
 0x6f1   :  { %1188 = dma.vmem_to_hbm [thread:$0]  %s1183_s13, 512, %s1801_s5, [#allocation3], %s1478_s6, %s1478_s6, %s1479_s14  }
 0x6f2   :  { %1464 = dma.done.wait [#allocation3], 512  }
 0x6f3   :  { %1465 = vsyncadd [#allocation3], 4294966784 }
 0x6f4   :  { %1196 = vsyncpa [#allocation3], 1 }

</bundles_post_ra>
